<compile_context>
chip_gen: v5e
topology: v5e:2x2
jax: 0.10.0
libtpu: 0.0.40
codegen_flags: <defaults>
</compile_context>

<pallas_src>
import functools
import math

import jax
import jax.numpy as jnp
from jax import lax
from jax.experimental import pallas as pl
from jax.experimental.pallas import tpu as pltpu

_MASK_VALUE = -1e30          # finite "-inf" for causal masking (no -inf - -inf NaNs)


def _default_vmem_limit():
    """~half of physical VMEM: 64 MiB on v5e/v6e (128 MiB), 32 MiB on v7x (64 MiB)."""
    try:
        cap = int(pltpu.get_tpu_info().vmem_capacity_bytes)
        return max(32 * 1024 * 1024, min(cap // 2, 96 * 1024 * 1024))
    except Exception:
        return 32 * 1024 * 1024


_VMEM_LIMIT = _default_vmem_limit()


def _pick_tile(dim, prefs):
    """Largest preferred tile that evenly divides dim, else the full dim."""
    for p in prefs:
        if dim % p == 0:
            return p
    return dim


# ---------------------------------------------------------------------------
# Linear (matmul + bias) kernel: used for in_proj and out_proj.
# K (= d_embed or 3*d_embed's input dim) always fits in one block for SD-scale
# embeddings, so there is no reduction grid axis and no accumulator scratch.
# ---------------------------------------------------------------------------
def _linear_kernel(x_ref, w_ref, b_ref, o_ref):
    o_ref[...] = (jnp.dot(x_ref[...], w_ref[...],
                          preferred_element_type=jnp.float32)
                  + b_ref[...]).astype(o_ref.dtype)


def _linear(x2d, w, b, out_dtype):
    """(M, K) @ (K, N) + (1, N) -> (M, N).  bf16 operands, f32 accumulate."""
    M, K = x2d.shape
    _, N = w.shape
    tm = _pick_tile(M, (512, 256, 128))
    tn = _pick_tile(N, (512, 256, 128))
    return pl.pallas_call(
        _linear_kernel,
        out_shape=jax.ShapeDtypeStruct((M, N), out_dtype),
        grid=(M // tm, N // tn),
        in_specs=[
            pl.BlockSpec((tm, K), lambda i, j: (i, 0)),
            pl.BlockSpec((K, tn), lambda i, j: (0, j)),
            pl.BlockSpec((1, tn), lambda i, j: (0, j)),
        ],
        out_specs=pl.BlockSpec((tm, tn), lambda i, j: (i, j)),
        compiler_params=pltpu.CompilerParams(
            dimension_semantics=("parallel", "parallel"),
            vmem_limit_bytes=_VMEM_LIMIT),
    )(x2d, w, b)


# ---------------------------------------------------------------------------
# Flash-attention kernel: grid (B, S//tq); K/V resident in VMEM for the whole
# sequence; kv tiles iterated in-kernel with an online-softmax carried in f32.
# ---------------------------------------------------------------------------
def _flash_kernel(q_ref, k_ref, v_ref, o_ref, *, scale, causal, tk):
    _, H, tq, Dh = q_ref.shape
    S = k_ref.shape[2]
    nk = S // tk
    qi = pl.program_id(1)          # top-level only (never inside control flow)

    # Fold 1/sqrt(Dh) into q once per q-tile (f32 mul, back to bf16 for the MXU)
    # instead of scaling the (H, tq, tk) score tensor on every kv step.
    q = (q_ref[0].astype(jnp.float32) * scale).astype(q_ref.dtype)   # (H, tq, Dh)

    if causal:
        # Row ids are constant across kv steps -> hoist out of the loop.
        row_ids = qi * tq + lax.broadcasted_iota(jnp.int32, (tq, tk), 0)
        # Last kv tile containing any unmasked column for this q tile (skips the
        # DMA-free but otherwise wasted compute on fully-masked tiles).
        kv_steps = (qi * tq + (tq - 1)) // tk + 1
    else:
        kv_steps = nk

    def body(kv, carry):
        m_prev, l_prev, acc_prev = carry
        start = kv * tk
        k = k_ref[0, :, pl.ds(start, tk), :]           # (H, tk, Dh) bf16
        v = v_ref[0, :, pl.ds(start, tk), :]           # (H, tk, Dh) bf16

        # All heads in one batched contraction; K consumed in stored (NT) layout.
        s = jnp.einsum('hqd,hkd->hqk', q, k,
                       preferred_element_type=jnp.float32)           # (H,tq,tk) f32
        if causal:
            col_ids = start + lax.broadcasted_iota(jnp.int32, (tq, tk), 1)
            s = jnp.where((col_ids > row_ids)[None, :, :],
                          jnp.float32(_MASK_VALUE), s)

        m_new = jnp.maximum(m_prev, jnp.max(s, axis=-1, keepdims=True))
        alpha = jnp.exp(m_prev - m_new)
        # exp kept in f32 so the same kernel stays accurate on v5e (no bf16 EUP);
        # on v6e/v7x a bf16 exp stream would roughly double EUP throughput.
        p = jnp.exp(s - m_new)                                        # (H,tq,tk) f32
        l_new = alpha * l_prev + jnp.sum(p, axis=-1, keepdims=True)
        acc_new = alpha * acc_prev + jnp.einsum(
            'hqk,hkd->hqd', p.astype(v.dtype), v,
            preferred_element_type=jnp.float32)
        return m_new, l_new, acc_new

    m0 = jnp.full((H, tq, 1), _MASK_VALUE, jnp.float32)
    l0 = jnp.zeros((H, tq, 1), jnp.float32)
    acc0 = jnp.zeros((H, tq, Dh), jnp.float32)
    m, l, acc = lax.fori_loop(0, kv_steps, body, (m0, l0, acc0))

    o_ref[0] = (acc * pl.reciprocal(l, approx=True)).astype(o_ref.dtype)


def _flash_attention(q, k, v, *, causal):
    """q, k, v: (B, H, S, Dh) bf16 -> (B, H, S, Dh) bf16."""
    B, H, S, Dh = q.shape
    tq = _pick_tile(S, (256, 128))
    tk = _pick_tile(S, (256, 128))
    kernel = functools.partial(_flash_kernel,
                               scale=1.0 / math.sqrt(Dh),
                               causal=causal, tk=tk)
    return pl.pallas_call(
        kernel,
        out_shape=jax.ShapeDtypeStruct((B, H, S, Dh), q.dtype),
        grid=(B, S // tq),
        in_specs=[
            pl.BlockSpec((1, H, tq, Dh), lambda b, qi: (b, 0, qi, 0)),
            # Full-sequence K/V blocks: constant block index across qi, so Pallas
            # fetches them from HBM once per batch and keeps them VMEM-resident.
            pl.BlockSpec((1, H, S, Dh), lambda b, qi: (b, 0, 0, 0)),
            pl.BlockSpec((1, H, S, Dh), lambda b, qi: (b, 0, 0, 0)),
        ],
        out_specs=pl.BlockSpec((1, H, tq, Dh), lambda b, qi: (b, 0, qi, 0)),
        compiler_params=pltpu.CompilerParams(
            dimension_semantics=("parallel", "parallel"),
            vmem_limit_bytes=_VMEM_LIMIT),
    )(q, k, v)


# ---------------------------------------------------------------------------
# Public wrapper: matches the PyTorch SelfAttention.forward semantics.
# ---------------------------------------------------------------------------
def self_attention(x, w_in, b_in, w_out, b_out, *, n_heads, causal_mask=False):
    """x: (B, S, E); w_in: (3E, E); b_in: (3E,); w_out: (E, E); b_out: (E,).
    Weights use the PyTorch nn.Linear (out_features, in_features) convention."""
    B, S, E = x.shape
    Dh = E // n_heads
    out_dtype = x.dtype

    # bf16 operands for the MXU, f32 accumulation inside all kernels.
    xb = x.reshape(B * S, E).astype(jnp.bfloat16)
    w_in_t = jnp.asarray(w_in).T.astype(jnp.bfloat16)        # (E, 3E)
    b_in_r = jnp.asarray(b_in).reshape(1, 3 * E).astype(jnp.float32)
    w_out_t = jnp.asarray(w_out).T.astype(jnp.bfloat16)      # (E, E)
    b_out_r = jnp.asarray(b_out).reshape(1, E).astype(jnp.float32)

    # in_proj: (B*S, E) @ (E, 3E) + b
    qkv = _linear(xb, w_in_t, b_in_r, out_dtype=jnp.bfloat16)          # (B*S, 3E)

    # Head split: one reshape + one transpose (layout plumbing stays in the wrapper).
    qkv = qkv.reshape(B, S, 3, n_heads, Dh).transpose(2, 0, 3, 1, 4)   # (3, B, H, S, Dh)
    q, k, v = qkv[0], qkv[1], qkv[2]

    # Attention core: flash-style online softmax with VMEM-resident K/V.
    o = _flash_attention(q, k, v, causal=bool(causal_mask))            # (B, H, S, Dh)
    o = o.transpose(0, 2, 1, 3).reshape(B * S, E)

    # out_proj: (B*S, E) @ (E, E) + b
    out = _linear(o, w_out_t, b_out_r, out_dtype=out_dtype)
    return out.reshape(B, S, E)


# ---------------------------------------------------------------------------
# Pure-JAX f32 reference matching the PyTorch forward semantics.
# ---------------------------------------------------------------------------
def _reference(x, w_in, b_in, w_out, b_out, *, n_heads, causal_mask=False):
    B, S, E = x.shape
    d_head = E // n_heads
    qkv = jnp.einsum('bse,oe->bso', x, w_in) + b_in
    q, k, v = jnp.split(qkv, 3, axis=-1)
    q = q.reshape(B, S, n_heads, d_head).transpose(0, 2, 1, 3)
    k = k.reshape(B, S, n_heads, d_head).transpose(0, 2, 1, 3)
    v = v.reshape(B, S, n_heads, d_head).transpose(0, 2, 1, 3)
    att = jnp.einsum('bhqd,bhkd->bhqk', q, k) / math.sqrt(d_head)
    if causal_mask:
        mask = jnp.triu(jnp.ones((S, S), dtype=bool), 1)
        att = jnp.where(mask[None, None], -jnp.inf, att)
    att = jax.nn.softmax(att, axis=-1)
    out = jnp.einsum('bhqk,bhkd->bhqd', att, v)
    out = out.transpose(0, 2, 1, 3).reshape(B, S, E)
    return jnp.einsum('bse,oe->bso', out, w_out) + b_out


if __name__ == "__main__":
    def _run_case(B, S, E, H, tol):
        k1, k2, k3, k4, k5 = jax.random.split(jax.random.PRNGKey(0), 5)
        x = jax.random.normal(k1, (B, S, E), dtype=jnp.float32)
        # nn.Linear weight shapes: (out_features, in_features).
        w_in = jax.random.normal(k2, (3 * E, E), dtype=jnp.float32) * 0.05
        b_in = jax.random.normal(k3, (3 * E,), dtype=jnp.float32) * 0.05
        w_out = jax.random.normal(k4, (E, E), dtype=jnp.float32) * 0.05
        b_out = jax.random.normal(k5, (E,), dtype=jnp.float32) * 0.05

        for causal in (False, True):
            out = self_attention(x, w_in, b_in, w_out, b_out,
                                 n_heads=H, causal_mask=causal)
            jax.block_until_ready(out)
            ref = _reference(x, w_in, b_in, w_out, b_out,
                             n_heads=H, causal_mask=causal)
            assert jnp.allclose(out, ref, atol=tol, rtol=tol), (
                f"mismatch: B={B} S={S} E={E} H={H} causal={causal}")

    # Tolerances are loose vs the f32 reference because the kernels run bf16
    # MXU operands with f32 accumulation (plus an approx reciprocal epilogue).
    _run_case(2, 8, 32, 4, 2e-2)      # full-extent-block path (tiny shapes)
    _run_case(1, 512, 64, 4, 3e-2)    # tiled path: 2 q tiles, multi-step kv loop, causal clamp

    print("KERNEL_OK")
</pallas_src>

<mosaic_0001>
module attributes {stable_mosaic.version = 11 : i64} {
  func.func @_linear_kernel(%arg0: i32, %arg1: i32, %arg2: memref<16x32xbf16, #tpu.memory_space<vmem>>, %arg3: memref<32x96xbf16, #tpu.memory_space<vmem>>, %arg4: memref<1x96xf32, #tpu.memory_space<vmem>>, %arg5: memref<16x96xbf16, #tpu.memory_space<vmem>>) attributes {dimension_semantics = [#tpu.dimension_semantics<parallel>, #tpu.dimension_semantics<parallel>], iteration_bounds = array<i64: 1, 1>, scalar_prefetch = 0 : i64, scratch_operands = 0 : i64, tpu.core_type = #tpu.core_type<tc>, window_params = [{transform_indices = @transform_0, window_bounds = array<i64: 16, 32>}, {transform_indices = @transform_1, window_bounds = array<i64: 32, 96>}, {transform_indices = @transform_2, window_bounds = array<i64: 1, 96>}, {transform_indices = @transform_3, window_bounds = array<i64: 16, 96>}]} {
    %c0 = arith.constant 0 : index
    %c0_0 = arith.constant 0 : index
    %0 = vector.load %arg2[%c0, %c0_0] : memref<16x32xbf16, #tpu.memory_space<vmem>>, vector<16x32xbf16>
    %c0_1 = arith.constant 0 : index
    %c0_2 = arith.constant 0 : index
    %1 = vector.load %arg3[%c0_1, %c0_2] : memref<32x96xbf16, #tpu.memory_space<vmem>>, vector<32x96xbf16>
    %cst = arith.constant dense<0.000000e+00> : vector<16x96xf32>
    %2 = tpu.matmul %0, %1, %cst {dimension_numbers = #tpu.dot_dimension_numbers<[1], [0], [0], [1], [0, 0, 1, 1], [], []>} : vector<16x32xbf16>, vector<32x96xbf16>, vector<16x96xf32> -> vector<16x96xf32>
    %c0_3 = arith.constant 0 : index
    %c0_4 = arith.constant 0 : index
    %3 = vector.load %arg4[%c0_3, %c0_4] : memref<1x96xf32, #tpu.memory_space<vmem>>, vector<1x96xf32>
    %4 = vector.broadcast %3 : vector<1x96xf32> to vector<16x96xf32>
    %5 = arith.addf %2, %4 : vector<16x96xf32>
    %6 = arith.truncf %5 : vector<16x96xf32> to vector<16x96xbf16>
    %c0_5 = arith.constant 0 : index
    %c0_6 = arith.constant 0 : index
    %7 = vector.load %arg5[%c0_5, %c0_6] : memref<16x96xbf16, #tpu.memory_space<vmem>>, vector<16x96xbf16>
    tpu.vector_store %arg5[%c0_5, %c0_6], %6 {strides = array<i32>} : memref<16x96xbf16, #tpu.memory_space<vmem>>, vector<16x96xbf16>,
    return
  }
  func.func @transform_0(%arg0: i32, %arg1: i32) -> (i32, i32) {
    %c0_i32 = arith.constant 0 : i32
    %c0_i32_0 = arith.constant 0 : i32
    return %arg0, %c0_i32 : i32, i32
  }
  func.func @transform_1(%arg0: i32, %arg1: i32) -> (i32, i32) {
    %c0_i32 = arith.constant 0 : i32
    %c0_i32_0 = arith.constant 0 : i32
    return %c0_i32, %arg1 : i32, i32
  }
  func.func @transform_2(%arg0: i32, %arg1: i32) -> (i32, i32) {
    %c0_i32 = arith.constant 0 : i32
    %c0_i32_0 = arith.constant 0 : i32
    return %c0_i32, %arg1 : i32, i32
  }
  func.func @transform_3(%arg0: i32, %arg1: i32) -> (i32, i32) {
    %c0_i32 = arith.constant 0 : i32
    return %arg0, %arg1 : i32, i32
  }
}

</mosaic_0001>

<bundles_post_ra>
// kernel: tpu_custom_call.1
= control target key start
LH: loop header
LB: loop body
LE: loop exit
PB: predicated region body
PF: predicated region fallthrough
CT: control target
= control target key end

     0   :  { %8 = vsyncpa [#allocation3], 0  ;;  %s264_s0 = inlined_call_operand.hbm [shape: bf16[16,32], index: 0, kind: input, shape index: {}]   ;;  %s265_s1 = inlined_call_operand.hbm [shape: bf16[32,96], index: 1, kind: input, shape index: {}]   ;;  %s266_s2 = inlined_call_operand.vmem [shape: f32[1,96], index: 2, kind: input, shape index: {}]   ;;  %s267_s3 = inlined_call_operand.hbm [shape: bf16[16,96], index: 3, kind: output, shape index: {}]  }
   0x1   :  { %9 = vsyncpa [#allocation6], 0 }
   0x2   :  { %10 = vsyncpa [#allocation4], 0  ;;  %s15_s14 = sshll.u32 %s264_s0, 4  ;;  %s218_s15 = smov [#allocation2]   ;;  %s16_s14 = int_to_ptr.hbm [resolvable:$true] %s15_s14 }
   0x3   :  { %s17_s16 = sshll.u32 %s218_s15, 4  ;;  %s28_s19 = sshll.u32 %s265_s1, 4  ;;  %s18_s16 = int_to_ptr.vmem [resolvable:$true] %s17_s16  ;;  %s29_s19 = int_to_ptr.hbm [resolvable:$true] %s28_s19 }
   0x4   :  { %s219_s20 = smov 64   ;;  %s220_s21 = smov 4  }
   0x5   :  { %23 = dma.hbm_to_vmem [thread:$0]  %s16_s14, 128, %s18_s16, [#allocation3], %s219_s20, %s219_s20, %s220_s21  }
   0x6   :  { %s221_s22 = smov [#allocation5]  }
   0x7   :  { %s30_s23 = sshll.u32 %s221_s22, 4  ;;  %s31_s23 = int_to_ptr.vmem [resolvable:$true] %s30_s23 }
   0x8   :  { %36 = dma.hbm_to_vmem [thread:$0]  %s29_s19, 256, %s31_s23, [#allocation6], %s219_s20, %s219_s20, %s220_s21  }
   0x9   :  { %212 = dma.done.wait [#allocation3], 128  }
   0xa   :  { %213 = vsyncadd [#allocation3], 4294967168 }
   0xb   :  { %214 = dma.done.wait [#allocation6], 256  }
   0xc   :  { %215 = vsyncadd [#allocation6], 4294967040  ;;  %v133_v0 = vld [vmem:[#allocation5 + $0x8] sm:$0xff]  ;;  %v132_v1 = vld [vmem:[#allocation5] sm:$0xff]  ;;  %vm75_vm0 = vcmask 261120   ;;  %vm95_vm1 = vcmask 781312  }
   0xd   :  { %85 = vmatpush.bf16.msra.mxu0 %v133_v0  ;;  %v131_v2 = vld [vmem:[#allocation2] sm:$0xff]  ;;  %s222_s24 = smov [#allocation7]   ;;  %s104_s28 = sshll.u32 %s267_s3, 4  ;;  %s105_s28 = int_to_ptr.hbm [resolvable:$true] %s104_s28 }
   0xe   :  { %v139_v3 = vld [vmem:[%s266_s2] ss:$0 sm:$0xff]  ;;  %s102_s25 = sshll.u32 %s222_s24, 4  ;;  %s103_s25 = int_to_ptr.vmem [resolvable:$true] %s102_s25 }
  0x11   :  { %86 = vmatpush.bf16.msra.mxu0 %v132_v1 }
  0x14   :  { %130 = vmatmul.msk.bf16.vlgmr.msra.gmra.mxu0 %vm75_vm0, %v131_v2 }
  0x91   :  { %v88_v4 = vpop.f32.mrf.mxu0 }
  0x92   :  { %v89_v5 = vadd.f32 %v139_v3, %v88_v4 }
  0x94   :  { %v93_v6 = vpack.c.bf16 %v89_v5, %v89_v5 }
  0x96   :  { %96 = vst.msk [vmem:[#allocation7] sm:$0xf] %vm95_vm1, %v93_v6 }
  0x99   :  { %v90_v7 = vpop.f32.mrf.mxu0 }
  0x9a   :  { %v91_v8 = vadd.f32 %v139_v3, %v90_v7 }
  0x9c   :  { %v94_v9 = vpack.c.bf16 %v91_v8, %v91_v8 }
  0x9e   :  { %97 = vst.msk [vmem:[#allocation7 + $0x4] sm:$0xf] %vm95_vm1, %v94_v9 }
  0x9f   :  { %110 = dma.vmem_to_hbm [thread:$0]  %s103_s25, 128, %s105_s28, [#allocation4], %s219_s20, %s219_s20, %s220_s21  }
  0xa0   :  { %216 = dma.done.wait [#allocation4], 128  }
  0xa1   :  { %217 = vsyncadd [#allocation4], 4294967168 }
  0xa2   :  { %115 = vsyncpa [#allocation3], 1 }
  0xa3   :  { %116 = vsyncpa [#allocation6], 1 }
  0xa4   :  { %117 = vsyncpa [#allocation4], 1 }

</bundles_post_ra>
